<compile_context>
chip_gen: v7x
topology: tpu7x:2x2x1
jax: 0.10.0
libtpu: 0.0.40
codegen_flags: <defaults>
</compile_context>

<pallas_src>
import functools

import jax
import jax.numpy as jnp
from jax.experimental import pallas as pl
from jax.experimental.pallas import tpu as pltpu


def find_multiple(n: int, k: int) -> int:
    if n % k == 0:
        return n
    return n + k - n % k


def _vmem_capacity_bytes() -> int:
    """Physical VMEM of this generation; conservative fallback (v7x = 64 MiB)."""
    try:
        return int(pltpu.get_tpu_info().vmem_capacity_bytes)
    except Exception:
        return 64 << 20


def _sublane_pack(dtype) -> int:
    # f32 -> 8, bf16 -> 16, int8/fp8 -> 32 (sublane packing of the vreg).
    return max(8, 32 // jnp.dtype(dtype).itemsize)


def _pick_tile_h(hidden: int, requested: int) -> int:
    """Largest lane-aligned (multiple of 128) divisor of `hidden` <= requested."""
    t = min(requested, hidden)
    t = (t // 128) * 128
    while t >= 128:
        if hidden % t == 0:
            return t
        t -= 128
    return hidden


def _pick_tile_n(n: int, requested: int, dtype) -> int:
    """Token tile: 256-aligned for the 256x256 MXU, 128 floor, packed tail for tiny n."""
    pack = _sublane_pack(dtype)
    if n < 128:
        return find_multiple(n, pack)
    if requested <= 128 or n < 256:
        return 128
    tn = min(requested, n)
    return max(256, (tn // 256) * 256)


def _vmem_estimate(tn, th, dim, itm_x, itm_w, wbuf, use_scratch) -> int:
    x_tile = tn * dim * itm_x
    out_tile = tn * dim * itm_x
    w_tiles = (2 * dim * th + th * dim) * itm_w   # w1 + w3 + w2 tiles
    est = 2 * x_tile + 2 * out_tile + wbuf * w_tiles
    if use_scratch:
        est += tn * dim * 4
    return est


def _ffn_kernel_accout(x_ref, w1_ref, w3_ref, w2_ref, o_ref):
    # f32 activations: the output block is VMEM-resident across h, so accumulate
    # into it directly (no scratch).
    h = pl.program_id(1)

    @pl.when(h == 0)
    def _():
        o_ref[...] = jnp.zeros_like(o_ref)

    x = x_ref[...]
    h1 = jnp.dot(x, w1_ref[...], preferred_element_type=jnp.float32)
    h3 = jnp.dot(x, w3_ref[...], preferred_element_type=jnp.float32)
    g = (h1 * jax.nn.sigmoid(h1)) * h3            # SiLU(h1) * h3, f32
    o_ref[...] += jnp.dot(g.astype(w2_ref.dtype), w2_ref[...],
                          preferred_element_type=jnp.float32)


def _ffn_kernel_scratch(x_ref, w1_ref, w3_ref, w2_ref, o_ref, acc_ref):
    # Sub-f32 activations/output: keep a f32 accumulator in scratch, flush at the end.
    h = pl.program_id(1)

    @pl.when(h == 0)
    def _():
        acc_ref[...] = jnp.zeros_like(acc_ref)

    x = x_ref[...]
    h1 = jnp.dot(x, w1_ref[...], preferred_element_type=jnp.float32)
    h3 = jnp.dot(x, w3_ref[...], preferred_element_type=jnp.float32)
    g = (h1 * jax.nn.sigmoid(h1)) * h3
    acc_ref[...] += jnp.dot(g.astype(w2_ref.dtype), w2_ref[...],
                            preferred_element_type=jnp.float32)

    @pl.when(h == pl.num_programs(1) - 1)
    def _():
        o_ref[...] = acc_ref[...].astype(o_ref.dtype)


@functools.partial(jax.jit, static_argnames=("tile_n", "tile_h", "weight_buffers"))
def feed_forward(x, w1_t, w3_t, w2_t, *, tile_n=512, tile_h=512, weight_buffers=None):
    """x: (..., dim). w*_t are (in, out) pre-transposed torch Linear weights."""
    *lead, dim = x.shape
    hidden = w1_t.shape[1]
    n = 1
    for d in lead:
        n *= d
    x2d = x.reshape(n, dim)

    itm_x = jnp.dtype(x.dtype).itemsize
    itm_w = jnp.dtype(w1_t.dtype).itemsize
    acc_in_output = jnp.dtype(x.dtype) == jnp.dtype(jnp.float32)
    use_scratch = not acc_in_output

    capacity = _vmem_capacity_bytes()
    cap = capacity - (8 << 20)                      # leave headroom below physical VMEM

    tn = _pick_tile_n(n, tile_n, x.dtype)
    th = _pick_tile_h(hidden, tile_h)

    # Shrink tiles until the double-buffered working set fits this generation's VMEM.
    while _vmem_estimate(tn, th, dim, itm_x, itm_w, 2, use_scratch) > cap:
        if th > 128:
            th = _pick_tile_h(hidden, th // 2)
        elif tn > 256:
            tn = max(256, ((tn // 2) // 256) * 256)
        elif tn > 128:
            tn = 128
        else:
            break

    grid = (pl.cdiv(n, tn), hidden // th)

    # Deeper weight prefetch hides DMA latency at h-step boundaries when streaming
    # over the hidden axis and there is VMEM headroom for a third buffer.
    if weight_buffers is None:
        wbuf = 3 if (grid[1] > 1 and
                     _vmem_estimate(tn, th, dim, itm_x, itm_w, 3, use_scratch) <= cap) else 2
    else:
        wbuf = int(weight_buffers)

    vmem_est = _vmem_estimate(tn, th, dim, itm_x, itm_w, wbuf, use_scratch)
    vmem_limit = int(min(capacity - (4 << 20), vmem_est + (16 << 20)))

    # Weights are re-streamed once per token tile (stay resident when grid[1] == 1).
    weight_reads = grid[0] if grid[1] > 1 else 1
    cost = pl.CostEstimate(
        flops=2 * n * dim * hidden * 3,
        transcendentals=n * hidden,
        bytes_accessed=(2 * n * dim * itm_x
                        + weight_reads * 3 * dim * hidden * itm_w),
    )

    wkw = {} if wbuf == 2 else {"pipeline_mode": pl.Buffered(wbuf)}
    in_specs = [
        pl.BlockSpec((tn, dim), lambda i, h: (i, 0)),          # x tile (resident across h)
        pl.BlockSpec((dim, th), lambda i, h: (0, h), **wkw),   # w1^T tile (streamed)
        pl.BlockSpec((dim, th), lambda i, h: (0, h), **wkw),   # w3^T tile (streamed)
        pl.BlockSpec((th, dim), lambda i, h: (h, 0), **wkw),   # w2^T tile (streamed)
    ]

    if acc_in_output:
        kernel = _ffn_kernel_accout
        scratch = []
    else:
        kernel = _ffn_kernel_scratch
        scratch = [pltpu.VMEM((tn, dim), jnp.float32)]

    out2d = pl.pallas_call(
        kernel,
        out_shape=jax.ShapeDtypeStruct((n, dim), x.dtype),
        grid_spec=pltpu.PrefetchScalarGridSpec(
            num_scalar_prefetch=0,
            grid=grid,
            in_specs=in_specs,
            out_specs=pl.BlockSpec((tn, dim), lambda i, h: (i, 0)),
            scratch_shapes=scratch,
        ),
        compiler_params=pltpu.CompilerParams(
            dimension_semantics=("parallel", "arbitrary"),
            vmem_limit_bytes=vmem_limit,
        ),
        cost_estimate=cost,
    )(x2d, w1_t, w3_t, w2_t)

    return out2d.reshape(*lead, dim)


def init_params(key, dim, dtype=jnp.float32):
    """Matches torch nn.Linear default init (uniform +-1/sqrt(fan_in)), pre-transposed."""
    hidden_dim = 4 * dim
    hidden_dim = int(2 * hidden_dim / 3)
    hidden_dim = find_multiple(hidden_dim, 256)
    k1, k2, k3 = jax.random.split(key, 3)
    b_in = 1.0 / jnp.sqrt(dim)
    b_hid = 1.0 / jnp.sqrt(hidden_dim)
    # Stored pre-transposed: (in_features, out_features)
    w1_t = jax.random.uniform(k1, (dim, hidden_dim), jnp.float32, -b_in, b_in).astype(dtype)
    w3_t = jax.random.uniform(k2, (dim, hidden_dim), jnp.float32, -b_in, b_in).astype(dtype)
    w2_t = jax.random.uniform(k3, (hidden_dim, dim), jnp.float32, -b_hid, b_hid).astype(dtype)
    return w1_t, w3_t, w2_t


def feed_forward_ref(x, w1_t, w3_t, w2_t):
    h1 = x @ w1_t
    h3 = x @ w3_t
    return (jax.nn.silu(h1) * h3) @ w2_t


if __name__ == "__main__":
    key = jax.random.PRNGKey(0)
    kx, kp, kx2, kx3 = jax.random.split(key, 4)

    # dim=128 -> hidden = find_multiple(int(8*128/3), 256) = 512
    dim = 128
    w1_t, w3_t, w2_t = init_params(kp, dim)

    # 1) Small case (single token tile, single hidden tile; weights VMEM-resident).
    x = jax.random.normal(kx, (2, 8, dim), jnp.float32)
    out = jax.block_until_ready(feed_forward(x, w1_t, w3_t, w2_t))
    ref = feed_forward_ref(x, w1_t, w3_t, w2_t)
    assert out.shape == x.shape
    assert jnp.allclose(out, ref, atol=1e-3, rtol=1e-3), "mismatch vs reference (case 1)"

    # 2) Multiple token tiles + accumulation over two hidden tiles (streamed weights,
    #    Buffered(3) prefetch, f32 accumulate-into-output path).
    x2 = jax.random.normal(kx2, (2, 384, dim), jnp.float32)
    out2 = jax.block_until_ready(feed_forward(x2, w1_t, w3_t, w2_t, tile_n=256, tile_h=256))
    ref2 = feed_forward_ref(x2, w1_t, w3_t, w2_t)
    assert jnp.allclose(out2, ref2, atol=1e-3, rtol=1e-3), "mismatch vs reference (case 2)"

    # 3) Ragged token count (partial last tile, no host-side padding).
    x3 = jax.random.normal(kx3, (3, 20, dim), jnp.float32)
    out3 = jax.block_until_ready(feed_forward(x3, w1_t, w3_t, w2_t, tile_h=256))
    ref3 = feed_forward_ref(x3, w1_t, w3_t, w2_t)
    assert jnp.allclose(out3, ref3, atol=1e-3, rtol=1e-3), "mismatch vs reference (case 3)"

    # 4) bf16 weights/activations (native MXU dtype, f32 scratch accumulator path).
    xb = x2.astype(jnp.bfloat16)
    w1b, w3b, w2b = (w.astype(jnp.bfloat16) for w in (w1_t, w3_t, w2_t))
    outb = jax.block_until_ready(feed_forward(xb, w1b, w3b, w2b, tile_h=256))
    refb = feed_forward_ref(xb.astype(jnp.float32), w1b.astype(jnp.float32),
                            w3b.astype(jnp.float32), w2b.astype(jnp.float32))
    assert jnp.allclose(outb.astype(jnp.float32), refb, atol=5e-2, rtol=5e-2), \
        "mismatch vs reference (case 4, bf16)"

    print("KERNEL_OK")
</pallas_src>

<mosaic_0001>
module attributes {stable_mosaic.version = 11 : i64} {
  func.func @_ffn_kernel_accout(%arg0: i32, %arg1: i32, %arg2: memref<16x128xf32, #tpu.memory_space<vmem>>, %arg3: memref<128x512xf32, #tpu.memory_space<vmem>>, %arg4: memref<128x512xf32, #tpu.memory_space<vmem>>, %arg5: memref<512x128xf32, #tpu.memory_space<vmem>>, %arg6: memref<16x128xf32, #tpu.memory_space<vmem>>) attributes {dimension_semantics = [#tpu.dimension_semantics<parallel>, #tpu.dimension_semantics<arbitrary>], iteration_bounds = array<i64: 1, 1>, scalar_prefetch = 0 : i64, scratch_operands = 0 : i64, tpu.core_type = #tpu.core_type<tc>, window_params = [{transform_indices = @transform_0, window_bounds = array<i64: 16, 128>}, {transform_indices = @transform_1, window_bounds = array<i64: 128, 512>}, {transform_indices = @transform_2, window_bounds = array<i64: 128, 512>}, {transform_indices = @transform_3, window_bounds = array<i64: 512, 128>}, {transform_indices = @transform_4, window_bounds = array<i64: 16, 128>}]} {
    %c0_i32 = arith.constant 0 : i32
    %0 = arith.cmpi eq, %arg1, %c0_i32 : i32
    %1 = arith.extui %0 : i1 to i32
    %c0_i32_0 = arith.constant 0 : i32
    %2 = arith.cmpi ne, %1, %c0_i32_0 : i32
    scf.if %2 {
      %cst_15 = arith.constant 0.000000e+00 : f32
      %20 = vector.broadcast %cst_15 : f32 to vector<16x128xf32>
      %c0_16 = arith.constant 0 : index
      %c0_17 = arith.constant 0 : index
      %21 = vector.load %arg6[%c0_16, %c0_17] : memref<16x128xf32, #tpu.memory_space<vmem>>, vector<16x128xf32>
      tpu.vector_store %arg6[%c0_16, %c0_17], %20 {strides = array<i32>} : memref<16x128xf32, #tpu.memory_space<vmem>>, vector<16x128xf32>,
    } else {
    }
    %c0 = arith.constant 0 : index
    %c0_1 = arith.constant 0 : index
    %3 = vector.load %arg2[%c0, %c0_1] : memref<16x128xf32, #tpu.memory_space<vmem>>, vector<16x128xf32>
    %c0_2 = arith.constant 0 : index
    %c0_3 = arith.constant 0 : index
    %4 = vector.load %arg3[%c0_2, %c0_3] : memref<128x512xf32, #tpu.memory_space<vmem>>, vector<128x512xf32>
    %cst = arith.constant dense<0.000000e+00> : vector<16x512xf32>
    %5 = tpu.matmul %3, %4, %cst {dimension_numbers = #tpu.dot_dimension_numbers<[1], [0], [0], [1], [0, 0, 1, 1], [], []>} : vector<16x128xf32>, vector<128x512xf32>, vector<16x512xf32> -> vector<16x512xf32>
    %c0_4 = arith.constant 0 : index
    %c0_5 = arith.constant 0 : index
    %6 = vector.load %arg4[%c0_4, %c0_5] : memref<128x512xf32, #tpu.memory_space<vmem>>, vector<128x512xf32>
    %cst_6 = arith.constant dense<0.000000e+00> : vector<16x512xf32>
    %7 = tpu.matmul %3, %6, %cst_6 {dimension_numbers = #tpu.dot_dimension_numbers<[1], [0], [0], [1], [0, 0, 1, 1], [], []>} : vector<16x128xf32>, vector<128x512xf32>, vector<16x512xf32> -> vector<16x512xf32>
    %8 = arith.negf %5 : vector<16x512xf32>
    %9 = math.exp %8 : vector<16x512xf32>
    %cst_7 = arith.constant 1.000000e+00 : f32
    %10 = vector.broadcast %cst_7 : f32 to vector<16x512xf32>
    %11 = arith.addf %10, %9 : vector<16x512xf32>
    %12 = arith.divf %10, %11 : vector<16x512xf32>
    %13 = arith.mulf %5, %12 : vector<16x512xf32>
    %14 = arith.mulf %13, %7 : vector<16x512xf32>
    %c0_8 = arith.constant 0 : index
    %c0_9 = arith.constant 0 : index
    %15 = vector.load %arg6[%c0_8, %c0_9] : memref<16x128xf32, #tpu.memory_space<vmem>>, vector<16x128xf32>
    %c0_10 = arith.constant 0 : index
    %c0_11 = arith.constant 0 : index
    %16 = vector.load %arg5[%c0_10, %c0_11] : memref<512x128xf32, #tpu.memory_space<vmem>>, vector<512x128xf32>
    %cst_12 = arith.constant dense<0.000000e+00> : vector<16x128xf32>
    %17 = tpu.matmul %14, %16, %cst_12 {dimension_numbers = #tpu.dot_dimension_numbers<[1], [0], [0], [1], [0, 0, 1, 1], [], []>} : vector<16x512xf32>, vector<512x128xf32>, vector<16x128xf32> -> vector<16x128xf32>
    %18 = arith.addf %15, %17 : vector<16x128xf32>
    %c0_13 = arith.constant 0 : index
    %c0_14 = arith.constant 0 : index
    %19 = vector.load %arg6[%c0_13, %c0_14] : memref<16x128xf32, #tpu.memory_space<vmem>>, vector<16x128xf32>
    tpu.vector_store %arg6[%c0_13, %c0_14], %18 {strides = array<i32>} : memref<16x128xf32, #tpu.memory_space<vmem>>, vector<16x128xf32>,
    return
  }
  func.func @transform_0(%arg0: i32, %arg1: i32) -> (i32, i32) {
    %c0_i32 = arith.constant 0 : i32
    %c0_i32_0 = arith.constant 0 : i32
    return %arg0, %c0_i32 : i32, i32
  }
  func.func @transform_1(%arg0: i32, %arg1: i32) -> (i32, i32) {
    %c0_i32 = arith.constant 0 : i32
    %c0_i32_0 = arith.constant 0 : i32
    return %c0_i32, %arg1 : i32, i32
  }
  func.func @transform_2(%arg0: i32, %arg1: i32) -> (i32, i32) {
    %c0_i32 = arith.constant 0 : i32
    %c0_i32_0 = arith.constant 0 : i32
    return %c0_i32, %arg1 : i32, i32
  }
  func.func @transform_3(%arg0: i32, %arg1: i32) -> (i32, i32) {
    %c0_i32 = arith.constant 0 : i32
    %c0_i32_0 = arith.constant 0 : i32
    return %arg1, %c0_i32 : i32, i32
  }
  func.func @transform_4(%arg0: i32, %arg1: i32) -> (i32, i32) {
    %c0_i32 = arith.constant 0 : i32
    %c0_i32_0 = arith.constant 0 : i32
    return %arg0, %c0_i32 : i32, i32
  }
}

</mosaic_0001>

<bundles_post_ra>
// kernel: feed_forward.1
= control target key start
LH: loop header
LB: loop body
LE: loop exit
PB: predicated region body
PF: predicated region fallthrough
CT: control target
= control target key end

     0   :  { %9 = vsyncpa [#allocation3], 0  ;;  %s1393_s0 = inlined_call_operand.hbm [shape: f32[16,128], index: 0, kind: input, shape index: {}]   ;;  %s1394_s1 = inlined_call_operand.hbm [shape: f32[128,512], index: 1, kind: input, shape index: {}]   ;;  %s1395_s2 = inlined_call_operand.hbm [shape: f32[128,512], index: 2, kind: input, shape index: {}]   ;;  %s1396_s3 = inlined_call_operand.hbm [shape: f32[512,128], index: 3, kind: input, shape index: {}]   ;;  %s1397_s4 = inlined_call_operand.hbm [shape: f32[16,128], index: 4, kind: output, shape index: {}]  }
   0x1   :  { %10 = vsyncpa [#allocation6], 0 }
   0x2   :  { %11 = vsyncpa [#allocation9], 0 }
   0x3   :  { %12 = vsyncpa [#allocation4], 0  ;;  %s1256_s15 = smov [#allocation5]   ;;  %s1138_s19 = scalar_lea.hbm %s1394_s1, 8192 }
   0x4   :  { %s30_s16 = sshll.u32 %s1256_s15, 4  ;;  %p1139_p0 = scmp.ne.s32.totalorder %s1394_s1, %s1138_s19  ;;  %s31_s16 = int_to_ptr.vmem [resolvable:$true] %s30_s16 }
   0x5   :  { %p1142_p1 = scmp.lt.u32.totalorder %s1138_s19, %s1394_s1 }
   0x7   :  { %p1144_p2 = pnand %p1142_p1, %p1139_p0 }
   0x9   :  { %1147 = shalt.err (!%p1144_p2)
}
   0xa   :  { %s1148_s24 = scalar_lea.vmem %s31_s16, 8192  ;;  %p1153_p4 = scmp.lt.s32.totalorder %s31_s16, %s31_s16 }
   0xb   :  { %p1149_p3 = scmp.ne.s32.totalorder %s31_s16, %s1148_s24  ;;  %p1154_p5 = scmp.lt.s32.totalorder %s1148_s24, %s1148_s24 }
   0xd   :  { %p1155_p6 = por %p1154_p5, %p1153_p4 }
   0xf   :  { %p1156_p7 = pnand %p1155_p6, %p1149_p3 }
  0x11   :  { %1159 = shalt.err (!%p1156_p7)
}
  0x12   :  { %s1257_s25 = smov 512   ;;  %s1258_s26 = smov 32  }
  0x13   :  { %36 = dma.hbm_to_vmem [thread:$0]  %s1394_s1, 8192, %s31_s16, [#allocation6], %s1257_s25, %s1257_s25, %s1258_s26  }
  0x14   :  { %s1259_s29 = smov [#allocation2]   ;;  %s1160_s7 = scalar_lea.hbm %s1393_s0, 256 }
  0x15   :  { %s18_s30 = sshll.u32 %s1259_s29, 4  ;;  %p1161_p8 = scmp.ne.s32.totalorder %s1393_s0, %s1160_s7  ;;  %s19_s30 = int_to_ptr.vmem [resolvable:$true] %s18_s30 }
  0x16   :  { %p1164_p9 = scmp.lt.u32.totalorder %s1160_s7, %s1393_s0 }
  0x18   :  { %p1166_p10 = pnand %p1164_p9, %p1161_p8 }
  0x1a   :  { %1169 = shalt.err (!%p1166_p10)
}
  0x1b   :  { %s1170_s12 = scalar_lea.vmem %s19_s30, 256  ;;  %p1175_p12 = scmp.lt.s32.totalorder %s19_s30, %s19_s30 }
  0x1c   :  { %p1171_p11 = scmp.ne.s32.totalorder %s19_s30, %s1170_s12  ;;  %p1176_p13 = scmp.lt.s32.totalorder %s1170_s12, %s1170_s12 }
  0x1e   :  { %p1177_p0 = por %p1176_p13, %p1175_p12 }
  0x20   :  { %p1178_p1 = pnand %p1177_p0, %p1171_p11 }
  0x22   :  { %1181 = shalt.err (!%p1178_p1)
}
  0x23   :  { %s1260_s1 = smov 128   ;;  %s1261_s13 = smov 8  }
  0x24   :  { %24 = dma.hbm_to_vmem [thread:$0]  %s1393_s0, 256, %s19_s30, [#allocation3], %s1260_s1, %s1260_s1, %s1261_s13  }
  0x25   :  { %s1262_s16 = smov [#allocation7]   ;;  %s1263_s18 = smov [#allocation8]  }
  0x26   :  { %s42_s17 = sshll.u32 %s1262_s16, 4  ;;  %s54_s19 = sshll.u32 %s1263_s18, 4  ;;  %s43_s17 = int_to_ptr.vmem [resolvable:$true] %s42_s17  ;;  %s1321_s19 = int_to_ptr.vmem [resolvable:$true] %s54_s19 }
  0x27   :  { %s1182_s22 = scalar_lea.hbm %s1395_s2, 8192 }
  0x28   :  { %p1183_p2 = scmp.ne.s32.totalorder %s1395_s2, %s1182_s22  ;;  %p1186_p3 = scmp.lt.u32.totalorder %s1182_s22, %s1395_s2 }
  0x2a   :  { %p1188_p4 = pnand %p1186_p3, %p1183_p2 }
  0x2c   :  { %1191 = shalt.err (!%p1188_p4)
}
  0x2d   :  { %s1192_s0 = scalar_lea.vmem %s43_s17, 8192  ;;  %p1197_p6 = scmp.lt.s32.totalorder %s43_s17, %s43_s17 }
  0x2e   :  { %p1193_p5 = scmp.ne.s32.totalorder %s43_s17, %s1192_s0  ;;  %p1198_p7 = scmp.lt.s32.totalorder %s1192_s0, %s1192_s0 }
  0x30   :  { %p1199_p8 = por %p1198_p7, %p1197_p6 }
  0x32   :  { %p1200_p9 = pnand %p1199_p8, %p1193_p5 }
  0x34   :  { %1203 = shalt.err (!%p1200_p9)
}
  0x35   :  { %48 = dma.hbm_to_vmem [thread:$0]  %s1395_s2, 8192, %s43_s17, [#allocation6], %s1257_s25, %s1257_s25, %s1258_s26  }
  0x36   :  { %s1204_s7 = scalar_lea.hbm %s1396_s3, 8192 }
  0x37   :  { %p1205_p10 = scmp.ne.s32.totalorder %s1396_s3, %s1204_s7  ;;  %p1208_p11 = scmp.lt.u32.totalorder %s1204_s7, %s1396_s3 }
  0x39   :  { %p1210_p12 = pnand %p1208_p11, %p1205_p10 }
  0x3b   :  { %1213 = shalt.err (!%p1210_p12)
}
  0x3c   :  { %s1214_s12 = scalar_lea.vmem %s1321_s19, 8192  ;;  %p1219_p0 = scmp.lt.s32.totalorder %s1321_s19, %s1321_s19 }
  0x3d   :  { %p1215_p13 = scmp.ne.s32.totalorder %s1321_s19, %s1214_s12  ;;  %p1220_p1 = scmp.lt.s32.totalorder %s1214_s12, %s1214_s12 }
  0x3f   :  { %p1221_p2 = por %p1220_p1, %p1219_p0 }
  0x41   :  { %p1222_p3 = pnand %p1221_p2, %p1215_p13 }
  0x43   :  { %1225 = shalt.err (!%p1222_p3)
}
  0x44   :  { %60 = dma.hbm_to_vmem [thread:$0]  %s1396_s3, 8192, %s1321_s19, [#allocation9], %s1260_s1, %s1260_s1, %s1261_s13  }
  0x45   :  { %1248 = dma.done.wait [#allocation3], 256  }
  0x46   :  { %1249 = vsyncadd [#allocation3], 4294967040 }
  0x47   :  { %1250 = dma.done.wait [#allocation6], 16384  }
  0x48   :  { %1251 = vsyncadd [#allocation6], 4294950912 }
  0x49   :  { %1252 = dma.done.wait [#allocation9], 8192  }
  0x4a   :  { %1253 = vsyncadd [#allocation9], 4294959104  ;;  %v1264_v0 = vmov 0.0   ;;  %v82_v1 = vld [vmem:[#allocation5 + $0x8] sm:$0xff]  ;;  %v84_v3 = vld [vmem:[#allocation5 + $0x18] sm:$0xff]  ;;  %s1265_s3 = smov [#allocation10]  }
  0x4b   :  { %209 = vmatprep.mubr.f32.mxu0 %v1264_v0  ;;  %286 = vmatprep.mubr.f32.mxu1 %v1264_v0  ;;  %v86_v2 = vld [vmem:[#allocation5 + $0x28] sm:$0xff]  ;;  %v88_v5 = vld [vmem:[#allocation5 + $0x38] sm:$0xff]  ;;  %v81_v6 = vld [vmem:[#allocation5] sm:$0xff]  ;;  %s806_s26 = sshll.u32 %s1265_s3, 4  ;;  %s807_s26 = int_to_ptr.vmem [resolvable:$true] %s806_s26 }
  0x4c   :  { %v904_v4 = vpack.c.bf16 %v86_v2, %v82_v1  ;;  %v85_v7 = vld [vmem:[#allocation5 + $0x20] sm:$0xff]  ;;  %v936_v8 = vpack.c.bf16 %v88_v5, %v84_v3  ;;  %v83_v10 = vld [vmem:[#allocation5 + $0x10] sm:$0xff]  ;;  %v90_v12 = vld [vmem:[#allocation5 + $0x48] sm:$0xff]  ;;  %s1226_s14 = scalar_lea.vmem %s807_s26, 256  ;;  %p1231_p5 = scmp.lt.s32.totalorder %s807_s26, %s807_s26 }
  0x4d   :  { %v906_v9 = vpack.c.bf16 %v85_v7, %v81_v6  ;;  %v87_v11 = vld [vmem:[#allocation5 + $0x30] sm:$0xff]  ;;  %v94_v14 = vld [vmem:[#allocation5 + $0x68] sm:$0xff]  ;;  %v92_v15 = vld [vmem:[#allocation5 + $0x58] sm:$0xff]  ;;  %p1227_p4 = scmp.ne.s32.totalorder %s807_s26, %s1226_s14  ;;  %p1232_p6 = scmp.lt.s32.totalorder %s1226_s14, %s1226_s14 }
  0x4e   :  { %905 = vmatprep.subr.bf16.mxu0 %v904_v4  ;;  %v938_v13 = vpack.c.bf16 %v87_v11, %v83_v10  ;;  %v96_v16 = vld [vmem:[#allocation5 + $0x78] sm:$0xff]  ;;  %937 = vmatprep.subr.bf16.mxu1 %v936_v8  ;;  %v908_v17 = vpack.c.bf16 %v94_v14, %v90_v12  ;;  %v89_v19 = vld [vmem:[#allocation5 + $0x40] sm:$0xff]  ;;  %v91_v21 = vld [vmem:[#allocation5 + $0x50] sm:$0xff] }
  0x4f   :  { %907 = vmatpush1.bf16.msra.mxu0 %v906_v9  ;;  %v940_v18 = vpack.c.bf16 %v96_v16, %v92_v15  ;;  %v93_v20 = vld [vmem:[#allocation5 + $0x60] sm:$0xff]  ;;  %v95_v23 = vld [vmem:[#allocation5 + $0x70] sm:$0xff]  ;;  %v98_v24 = vld [vmem:[#allocation5 + $0x88] sm:$0xff]  ;;  %p1233_p7 = por %p1232_p6, %p1231_p5 }
  0x50   :  { %939 = vmatpush1.bf16.msra.mxu1 %v938_v13  ;;  %v910_v22 = vpack.c.bf16 %v93_v20, %v89_v19  ;;  %v102_v25 = vld [vmem:[#allocation5 + $0xa8] sm:$0xff]  ;;  %909 = vmatprep.subr.bf16.mxu0 %v908_v17  ;;  %v942_v26 = vpack.c.bf16 %v95_v23, %v91_v21  ;;  %v100_v28 = vld [vmem:[#allocation5 + $0x98] sm:$0xff]  ;;  %v97_v30 = vld [vmem:[#allocation5 + $0x80] sm:$0xff] }
  0x51   :  { %941 = vmatprep.subr.bf16.mxu1 %v940_v18  ;;  %v912_v27 = vpack.c.bf16 %v102_v25, %v98_v24  ;;  %v104_v29 = vld [vmem:[#allocation5 + $0xb8] sm:$0xff]  ;;  %v101_v32 = vld [vmem:[#allocation5 + $0xa0] sm:$0xff]  ;;  %v99_v33 = vld [vmem:[#allocation5 + $0x90] sm:$0xff]  ;;  %p1234_p8 = pnand %p1233_p7, %p1227_p4 }
  0x52   :  { %v944_v31 = vpack.c.bf16 %v104_v29, %v100_v28  ;;  %v103_v34 = vld [vmem:[#allocation5 + $0xb0] sm:$0xff]  ;;  %v914_v35 = vpack.c.bf16 %v101_v32, %v97_v30  ;;  %v106_v36 = vld [vmem:[#allocation5 + $0xc8] sm:$0xff]  ;;  %v108_v38 = vld [vmem:[#allocation5 + $0xd8] sm:$0xff] }
  0x53   :  { %911 = vmatpush1.bf16.msra.mxu0 %v910_v22  ;;  %v110_v37 = vld [vmem:[#allocation5 + $0xe8] sm:$0xff]  ;;  %v946_v39 = vpack.c.bf16 %v103_v34, %v99_v33  ;;  %v112_v41 = vld [vmem:[#allocation5 + $0xf8] sm:$0xff]  ;;  %v105_v42 = vld [vmem:[#allocation5 + $0xc0] sm:$0xff] }
  0x54   :  { %943 = vmatpush1.bf16.msra.mxu1 %v942_v26  ;;  %913 = vmatprep.subr.bf16.mxu0 %v912_v27  ;;  %v916_v40 = vpack.c.bf16 %v110_v37, %v106_v36  ;;  %v109_v43 = vld [vmem:[#allocation5 + $0xe0] sm:$0xff]  ;;  %v948_v44 = vpack.c.bf16 %v112_v41, %v108_v38  ;;  %v107_v45 = vld [vmem:[#allocation5 + $0xd0] sm:$0xff]  ;;  %v114_v47 = vld [vmem:[#allocation5 + $0x108] sm:$0xff] }
  0x55   :  { %945 = vmatprep.subr.bf16.mxu1 %v944_v31  ;;  %v111_v46 = vld [vmem:[#allocation5 + $0xf0] sm:$0xff]  ;;  %v118_v48 = vld [vmem:[#allocation5 + $0x128] sm:$0xff]  ;;  %v116_v49 = vld [vmem:[#allocation5 + $0x118] sm:$0xff]  ;;  %v918_v51 = vpack.c.bf16 %v109_v43, %v105_v42 }
  0x56   :  { %v120_v50 = vld [vmem:[#allocation5 + $0x138] sm:$0xff]  ;;  %v950_v52 = vpack.c.bf16 %v111_v46, %v107_v45  ;;  %v920_v53 = vpack.c.bf16 %v118_v48, %v114_v47  ;;  %v113_v54 = vld [vmem:[#allocation5 + $0x100] sm:$0xff]  ;;  %v115_v56 = vld [vmem:[#allocation5 + $0x110] sm:$0xff] }
  0x57   :  { %915 = vmatpush1.bf16.msra.mxu0 %v914_v35  ;;  %v117_v55 = vld [vmem:[#allocation5 + $0x120] sm:$0xff]  ;;  %v952_v57 = vpack.c.bf16 %v120_v50, %v116_v49  ;;  %v119_v58 = vld [vmem:[#allocation5 + $0x130] sm:$0xff]  ;;  %v122_v59 = vld [vmem:[#allocation5 + $0x148] sm:$0xff] }
  0x58   :  { %947 = vmatpush1.bf16.msra.mxu1 %v946_v39  ;;  %917 = vmatprep.subr.bf16.mxu0 %v916_v40  ;;  %v126_v60 = vld [vmem:[#allocation5 + $0x168] sm:$0xff]  ;;  %v124_v61 = vld [vmem:[#allocation5 + $0x158] sm:$0xff]  ;;  %v922_v63 = vpack.c.bf16 %v117_v55, %v113_v54  ;;  %v954_v1 = vpack.c.bf16 %v119_v58, %v115_v56  ;;  %v121_v3 = vld [vmem:[#allocation5 + $0x140] sm:$0xff] }
  0x59   :  { %949 = vmatprep.subr.bf16.mxu1 %v948_v44  ;;  %v128_v62 = vld [vmem:[#allocation5 + $0x178] sm:$0xff]  ;;  %v924_v2 = vpack.c.bf16 %v126_v60, %v122_v59  ;;  %v125_v4 = vld [vmem:[#allocation5 + $0x160] sm:$0xff]  ;;  %v123_v5 = vld [vmem:[#allocation5 + $0x150] sm:$0xff] }
  0x5a   :  { %v956_v6 = vpack.c.bf16 %v128_v62, %v124_v61  ;;  %v127_v7 = vld [vmem:[#allocation5 + $0x170] sm:$0xff]  ;;  %v130_v8 = vld [vmem:[#allocation5 + $0x188] sm:$0xff]  ;;  %v132_v10 = vld [vmem:[#allocation5 + $0x198] sm:$0xff]  ;;  %v926_v12 = vpack.c.bf16 %v125_v4, %v121_v3 }
  0x5b   :  { %919 = vmatpush1.bf16.msra.mxu0 %v918_v51  ;;  %v134_v9 = vld [vmem:[#allocation5 + $0x1a8] sm:$0xff]  ;;  %v136_v11 = vld [vmem:[#allocation5 + $0x1b8] sm:$0xff]  ;;  %v958_v13 = vpack.c.bf16 %v127_v7, %v123_v5  ;;  %v129_v15 = vld [vmem:[#allocation5 + $0x180] sm:$0xff] }
  0x5c   :  { %951 = vmatpush1.bf16.msra.mxu1 %v950_v52  ;;  %921 = vmatprep.subr.bf16.mxu0 %v920_v53  ;;  %v928_v14 = vpack.c.bf16 %v134_v9, %v130_v8  ;;  %v133_v16 = vld [vmem:[#allocation5 + $0x1a0] sm:$0xff]  ;;  %v131_v17 = vld [vmem:[#allocation5 + $0x190] sm:$0xff]  ;;  %v960_v18 = vpack.c.bf16 %v136_v11, %v132_v10  ;;  %v138_v20 = vld [vmem:[#allocation5 + $0x1c8] sm:$0xff] }
  0x5d   :  { %953 = vmatprep.subr.bf16.mxu1 %v952_v57  ;;  %v135_v19 = vld [vmem:[#allocation5 + $0x1b0] sm:$0xff]  ;;  %v142_v21 = vld [vmem:[#allocation5 + $0x1e8] sm:$0xff]  ;;  %v140_v22 = vld [vmem:[#allocation5 + $0x1d8] sm:$0xff]  ;;  %v930_v24 = vpack.c.bf16 %v133_v16, %v129_v15 }
  0x5e   :  { %v144_v23 = vld [vmem:[#allocation5 + $0x1f8] sm:$0xff]  ;;  %v962_v25 = vpack.c.bf16 %v135_v19, %v131_v17  ;;  %v932_v26 = vpack.c.bf16 %v142_v21, %v138_v20  ;;  %v137_v27 = vld [vmem:[#allocation5 + $0x1c0] sm:$0xff]  ;;  %v139_v29 = vld [vmem:[#allocation5 + $0x1d0] sm:$0xff] }
  0x5f   :  { %923 = vmatpush1.bf16.msra.mxu0 %v922_v63  ;;  %v141_v28 = vld [vmem:[#allocation5 + $0x1e0] sm:$0xff]  ;;  %v964_v30 = vpack.c.bf16 %v144_v23, %v140_v22  ;;  %v143_v31 = vld [vmem:[#allocation5 + $0x1f0] sm:$0xff]  ;;  %v300_v32 = vld [vmem:[#allocation7 + $0x8] sm:$0xff] }
  0x60   :  { %955 = vmatpush1.bf16.msra.mxu1 %v954_v1  ;;  %925 = vmatprep.subr.bf16.mxu0 %v924_v2  ;;  %v304_v33 = vld [vmem:[#allocation7 + $0x28] sm:$0xff]  ;;  %v302_v34 = vld [vmem:[#allocation7 + $0x18] sm:$0xff]  ;;  %v934_v36 = vpack.c.bf16 %v141_v28, %v137_v27  ;;  %v966_v37 = vpack.c.bf16 %v143_v31, %v139_v29  ;;  %v299_v39 = vld [vmem:[#allocation7] sm:$0xff] }
  0x61   :  { %957 = vmatprep.subr.bf16.mxu1 %v956_v6  ;;  %v306_v35 = vld [vmem:[#allocation7 + $0x38] sm:$0xff]  ;;  %v968_v38 = vpack.c.bf16 %v304_v33, %v300_v32  ;;  %v303_v40 = vld [vmem:[#allocation7 + $0x20] sm:$0xff]  ;;  %v301_v42 = vld [vmem:[#allocation7 + $0x10] sm:$0xff] }
  0x62   :  { %v1000_v41 = vpack.c.bf16 %v306_v35, %v302_v34  ;;  %v305_v43 = vld [vmem:[#allocation7 + $0x30] sm:$0xff]  ;;  %v308_v44 = vld [vmem:[#allocation7 + $0x48] sm:$0xff]  ;;  %v970_v47 = vpack.c.bf16 %v303_v40, %v299_v39  ;;  %v310_v48 = vld [vmem:[#allocation7 + $0x58] sm:$0xff] }
  0x63   :  { %927 = vmatpush1.bf16.msra.mxu0 %v926_v12  ;;  %v312_v45 = vld [vmem:[#allocation7 + $0x68] sm:$0xff]  ;;  %v1360_v46 = vld [vmem:[#allocation2] sm:$0xff]  ;;  %v314_v49 = vld [vmem:[#allocation7 + $0x78] sm:$0xff]  ;;  %v1002_v50 = vpack.c.bf16 %v305_v43, %v301_v42 }
  0x64   :  { %959 = vmatpush1.bf16.msra.mxu1 %v958_v13  ;;  %929 = vmatprep.subr.bf16.mxu0 %v928_v14  ;;  %v307_v51 = vld [vmem:[#allocation7 + $0x40] sm:$0xff]  ;;  %v309_v53 = vld [vmem:[#allocation7 + $0x50] sm:$0xff]  ;;  %v972_v54 = vpack.c.bf16 %v312_v45, %v308_v44  ;;  %v316_v56 = vld [vmem:[#allocation7 + $0x88] sm:$0xff]  ;;  %v1004_v58 = vpack.c.bf16 %v314_v49, %v310_v48 }
  0x65   :  { %961 = vmatprep.subr.bf16.mxu1 %v960_v18  ;;  %v311_v52 = vld [vmem:[#allocation7 + $0x60] sm:$0xff]  ;;  %v313_v55 = vld [vmem:[#allocation7 + $0x70] sm:$0xff]  ;;  %v320_v57 = vld [vmem:[#allocation7 + $0xa8] sm:$0xff] }
  0x66   :  { %v318_v59 = vld [vmem:[#allocation7 + $0x98] sm:$0xff]  ;;  %v974_v62 = vpack.c.bf16 %v311_v52, %v307_v51  ;;  %v1006_v63 = vpack.c.bf16 %v313_v55, %v309_v53  ;;  %v976_v1 = vpack.c.bf16 %v320_v57, %v316_v56  ;;  %v315_v2 = vld [vmem:[#allocation7 + $0x80] sm:$0xff]  ;;  %v317_v4 = vld [vmem:[#allocation7 + $0x90] sm:$0xff] }
  0x67   :  { %931 = vmatpush1.bf16.msra.mxu0 %v930_v24  ;;  %v322_v60 = vld [vmem:[#allocation7 + $0xb8] sm:$0xff]  ;;  %v319_v3 = vld [vmem:[#allocation7 + $0xa0] sm:$0xff]  ;;  %v321_v6 = vld [vmem:[#allocation7 + $0xb0] sm:$0xff] }
  0x68   :  { %963 = vmatpush1.bf16.msra.mxu1 %v962_v25  ;;  %933 = vmatprep.subr.bf16.mxu0 %v932_v26  ;;  %v1364_v61 = vld [vmem:[#allocation2 + $0x8] sm:$0xff]  ;;  %v1008_v5 = vpack.c.bf16 %v322_v60, %v318_v59  ;;  %v324_v7 = vld [vmem:[#allocation7 + $0xc8] sm:$0xff]  ;;  %v978_v11 = vpack.c.bf16 %v319_v3, %v315_v2  ;;  %v1010_v12 = vpack.c.bf16 %v321_v6, %v317_v4  ;;  %v323_v14 = vld [vmem:[#allocation7 + $0xc0] sm:$0xff] }
  0x69   :  { %965 = vmatprep.subr.bf16.mxu1 %v964_v30  ;;  %v328_v8 = vld [vmem:[#allocation7 + $0xe8] sm:$0xff]  ;;  %v326_v9 = vld [vmem:[#allocation7 + $0xd8] sm:$0xff]  ;;  %v327_v15 = vld [vmem:[#allocation7 + $0xe0] sm:$0xff] }
  0x6a   :  { %v330_v10 = vld [vmem:[#allocation7 + $0xf8] sm:$0xff]  ;;  %v980_v13 = vpack.c.bf16 %v328_v8, %v324_v7  ;;  %v325_v16 = vld [vmem:[#allocation7 + $0xd0] sm:$0xff]  ;;  %v332_v19 = vld [vmem:[#allocation7 + $0x108] sm:$0xff]  ;;  %v982_v23 = vpack.c.bf16 %v327_v15, %v323_v14 }
  0x6b   :  { %935 = vmatpush1.bf16.msra.mxu0 %v934_v36  ;;  %v1012_v17 = vpack.c.bf16 %v330_v10, %v326_v9  ;;  %v329_v18 = vld [vmem:[#allocation7 + $0xf0] sm:$0xff]  ;;  %v336_v20 = vld [vmem:[#allocation7 + $0x128] sm:$0xff]  ;;  %v334_v21 = vld [vmem:[#allocation7 + $0x118] sm:$0xff] }
  0x6c   :  { %967 = vmatpush1.bf16.msra.mxu1 %v966_v37  ;;  %969 = vmatprep.subr.bf16.mxu0 %v968_v38  ;;  %v338_v22 = vld [vmem:[#allocation7 + $0x138] sm:$0xff]  ;;  %v1014_v24 = vpack.c.bf16 %v329_v18, %v325_v16  ;;  %v984_v25 = vpack.c.bf16 %v336_v20, %v332_v19  ;;  %v331_v26 = vld [vmem:[#allocation7 + $0x100] sm:$0xff]  ;;  %v333_v28 = vld [vmem:[#allocation7 + $0x110] sm:$0xff] }
  0x6d   :  { %1001 = vmatprep.subr.bf16.mxu1 %v1000_v41  ;;  %v335_v27 = vld [vmem:[#allocation7 + $0x120] sm:$0xff]  ;;  %v1016_v29 = vpack.c.bf16 %v338_v22, %v334_v21  ;;  %v337_v30 = vld [vmem:[#allocation7 + $0x130] sm:$0xff]  ;;  %v340_v31 = vld [vmem:[#allocation7 + $0x148] sm:$0xff] }
  0x6e   :  { %210 = vmatmul.mubr.f32.vlgmr.msra.gmra.mrb[0].mxu0 %v1360_v46  ;;  %v344_v32 = vld [vmem:[#allocation7 + $0x168] sm:$0xff]  ;;  %v342_v33 = vld [vmem:[#allocation7 + $0x158] sm:$0xff]  ;;  %v986_v35 = vpack.c.bf16 %v335_v27, %v331_v26  ;;  %v1018_v36 = vpack.c.bf16 %v337_v30, %v333_v28  ;;  %v339_v38 = vld [vmem:[#allocation7 + $0x140] sm:$0xff] }
  0x6f   :  { %287 = vmatmul.mubr.f32.vlgmr.msra.gmra.mrb[0].mxu1 %v1360_v46  ;;  %971 = vmatpush1.bf16.msra.mxu0 %v970_v47  ;;  %v346_v34 = vld [vmem:[#allocation7 + $0x178] sm:$0xff]  ;;  %v988_v37 = vpack.c.bf16 %v344_v32, %v340_v31  ;;  %v343_v39 = vld [vmem:[#allocation7 + $0x160] sm:$0xff]  ;;  %v341_v40 = vld [vmem:[#allocation7 + $0x150] sm:$0xff] }
  0x70   :  { %1003 = vmatpush1.bf16.msra.mxu1 %v1002_v50  ;;  %215 = vmatprep.mubr.f32.mxu0 %v1264_v0  ;;  %v1020_v41 = vpack.c.bf16 %v346_v34, %v342_v33  ;;  %v345_v42 = vld [vmem:[#allocation7 + $0x170] sm:$0xff]  ;;  %v348_v43 = vld [vmem:[#allocation7 + $0x188] sm:$0xff]  ;;  %v350_v45 = vld [vmem:[#allocation7 + $0x198] sm:$0xff]  ;;  %v990_v48 = vpack.c.bf16 %v343_v39, %v339_v38 }
  0x71   :  { %292 = vmatprep.mubr.f32.mxu1 %v1264_v0  ;;  %973 = vmatprep.subr.bf16.mxu0 %v972_v54  ;;  %v352_v44 = vld [vmem:[#allocation7 + $0x1a8] sm:$0xff]  ;;  %v354_v47 = vld [vmem:[#allocation7 + $0x1b8] sm:$0xff]  ;;  %v1022_v49 = vpack.c.bf16 %v345_v42, %v341_v40  ;;  %v347_v51 = vld [vmem:[#allocation7 + $0x180] sm:$0xff] }
  0x72   :  { %216 = vmatmul.mubr.f32.gmra.mrb[2].mxu0 %v1364_v61  ;;  %1005 = vmatprep.subr.bf16.mxu1 %v1004_v58  ;;  %v992_v50 = vpack.c.bf16 %v352_v44, %v348_v43  ;;  %v351_v52 = vld [vmem:[#allocation7 + $0x1a0] sm:$0xff]  ;;  %v349_v53 = vld [vmem:[#allocation7 + $0x190] sm:$0xff]  ;;  %v1024_v54 = vpack.c.bf16 %v354_v47, %v350_v45  ;;  %v356_v56 = vld [vmem:[#allocation7 + $0x1c8] sm:$0xff] }
  0x73   :  { %293 = vmatmul.mubr.f32.gmra.mrb[2].mxu1 %v1364_v61  ;;  %975 = vmatpush1.bf16.msra.mxu0 %v974_v62  ;;  %v353_v55 = vld [vmem:[#allocation7 + $0x1b0] sm:$0xff]  ;;  %v360_v57 = vld [vmem:[#allocation7 + $0x1e8] sm:$0xff]  ;;  %v358_v58 = vld [vmem:[#allocation7 + $0x1d8] sm:$0xff]  ;;  %v994_v60 = vpack.c.bf16 %v351_v52, %v347_v51 }
  0x74   :  { %1007 = vmatpush1.bf16.msra.mxu1 %v1006_v63  ;;  %977 = vmatprep.subr.bf16.mxu0 %v976_v1  ;;  %v362_v59 = vld [vmem:[#allocation7 + $0x1f8] sm:$0xff]  ;;  %v1026_v62 = vpack.c.bf16 %v353_v55, %v349_v53  ;;  %v996_v63 = vpack.c.bf16 %v360_v57, %v356_v56  ;;  %v355_v1 = vld [vmem:[#allocation7 + $0x1c0] sm:$0xff]  ;;  %v357_v4 = vld [vmem:[#allocation7 + $0x1d0] sm:$0xff] }
  0x75   :  { %1009 = vmatprep.subr.bf16.mxu1 %v1008_v5  ;;  %427 = vmatprep.mubr.f32.mxu0 %v1264_v0  ;;  %v359_v2 = vld [vmem:[#allocation7 + $0x1e0] sm:$0xff]  ;;  %v1028_v3 = vpack.c.bf16 %v362_v59, %v358_v58  ;;  %v361_v5 = vld [vmem:[#allocation7 + $0x1f0] sm:$0xff]  ;;  %v600_v9 = vld [vmem:[#allocation8 + $0x88] sm:$0xff] }
  0x76   :  { %504 = vmatprep.mubr.f32.mxu1 %v1264_v0  ;;  %v998_v6 = vpack.c.bf16 %v359_v2, %v355_v1  ;;  %v1030_v7 = vpack.c.bf16 %v361_v5, %v357_v4  ;;  %v599_v8 = vld [vmem:[#allocation8 + $0x80] sm:$0xff]  ;;  %v584_v14 = vld [vmem:[#allocation8 + $0x8] sm:$0xff]  ;;  %v602_v19 = vld [vmem:[#allocation8 + $0x98] sm:$0xff] }
  0x77   :  { %979 = vmatpush1.bf16.msra.mxu0 %v978_v11  ;;  %v631_v10 = vld [vmem:[#allocation8 + $0x180] sm:$0xff]  ;;  %v1032_v11 = vpack.c.bf16 %v600_v9, %v599_v8  ;;  %v616_v18 = vld [vmem:[#allocation8 + $0x108] sm:$0xff]  ;;  %v633_v20 = vld [vmem:[#allocation8 + $0x190] sm:$0xff] }
  0x78   :  { %1011 = vmatpush1.bf16.msra.mxu1 %v1010_v12  ;;  %981 = vmatprep.subr.bf16.mxu0 %v980_v13  ;;  %v632_v12 = vld [vmem:[#allocation8 + $0x188] sm:$0xff]  ;;  %v583_v13 = vld [vmem:[#allocation8] sm:$0xff]  ;;  %v634_v21 = vld [vmem:[#allocation8 + $0x198] sm:$0xff] }
  0x79   :  { %1013 = vmatprep.subr.bf16.mxu1 %v1012_v17  ;;  %v1064_v15 = vpack.c.bf16 %v632_v12, %v631_v10  ;;  %v1034_v16 = vpack.c.bf16 %v584_v14, %v583_v13  ;;  %v615_v17 = vld [vmem:[#allocation8 + $0x100] sm:$0xff]  ;;  %v585_v22 = vld [vmem:[#allocation8 + $0x10] sm:$0xff]  ;;  %v618_v27 = vld [vmem:[#allocation8 + $0x118] sm:$0xff] }
  0x7a   :  { %v617_v26 = vld [vmem:[#allocation8 + $0x110] sm:$0xff]  ;;  %v604_v30 = vld [vmem:[#allocation8 + $0xa8] sm:$0xff]  ;;  %v635_v31 = vld [vmem:[#allocation8 + $0x1a0] sm:$0xff] }
  0x7b   :  { %983 = vmatpush1.bf16.msra.mxu0 %v982_v23  ;;  %v586_v23 = vld [vmem:[#allocation8 + $0x18] sm:$0xff]  ;;  %v1070_v28 = vpack.c.bf16 %v618_v27, %v617_v26  ;;  %v636_v33 = vld [vmem:[#allocation8 + $0x1a8] sm:$0xff]  ;;  %v587_v34 = vld [vmem:[#allocation8 + $0x20] sm:$0xff] }
  0x7c   :  { %1015 = vmatpush1.bf16.msra.mxu1 %v1014_v24  ;;  %985 = vmatprep.subr.bf16.mxu0 %v984_v25  ;;  %v1068_v24 = vpack.c.bf16 %v634_v21, %v633_v20  ;;  %v1038_v25 = vpack.c.bf16 %v586_v23, %v585_v22  ;;  %v619_v38 = vld [vmem:[#allocation8 + $0x120] sm:$0xff]  ;;  %v620_v39 = vld [vmem:[#allocation8 + $0x128] sm:$0xff]  ;;  %v606_v42 = vld [vmem:[#allocation8 + $0xb8] sm:$0xff] }
  0x7d   :  { %1017 = vmatprep.subr.bf16.mxu1 %v1016_v29  ;;  %v603_v29 = vld [vmem:[#allocation8 + $0xa0] sm:$0xff]  ;;  %v1074_v40 = vpack.c.bf16 %v620_v39, %v619_v38  ;;  %v637_v43 = vld [vmem:[#allocation8 + $0x1b0] sm:$0xff]  ;;  %v638_v45 = vld [vmem:[#allocation8 + $0x1b8] sm:$0xff] }
  0x7e   :  { %v1040_v32 = vpack.c.bf16 %v604_v30, %v603_v29  ;;  %v589_v47 = vld [vmem:[#allocation8 + $0x30] sm:$0xff]  ;;  %v622_v52 = vld [vmem:[#allocation8 + $0x138] sm:$0xff]  ;;  %v608_v55 = vld [vmem:[#allocation8 + $0xc8] sm:$0xff] }
  0x7f   :  { %987 = vmatpush1.bf16.msra.mxu0 %v986_v35  ;;  %v588_v35 = vld [vmem:[#allocation8 + $0x28] sm:$0xff]  ;;  %v621_v51 = vld [vmem:[#allocation8 + $0x130] sm:$0xff]  ;;  %v639_v56 = vld [vmem:[#allocation8 + $0x1c0] sm:$0xff] }
  0x80   :  { %1019 = vmatpush1.bf16.msra.mxu1 %v1018_v36  ;;  %989 = vmatprep.subr.bf16.mxu0 %v988_v37  ;;  %v1072_v36 = vpack.c.bf16 %v636_v33, %v635_v31  ;;  %v1042_v37 = vpack.c.bf16 %v588_v35, %v587_v34  ;;  %v1078_v53 = vpack.c.bf16 %v622_v52, %v621_v51  ;;  %v640_v58 = vld [vmem:[#allocation8 + $0x1c8] sm:$0xff]  ;;  %v591_v59 = vld [vmem:[#allocation8 + $0x40] sm:$0xff]  ;;  %v609_v4 = vld [vmem:[#allocation8 + $0xd0] sm:$0xff] }
  0x81   :  { %1021 = vmatprep.subr.bf16.mxu1 %v1020_v41  ;;  %v605_v41 = vld [vmem:[#allocation8 + $0xb0] sm:$0xff]  ;;  %v623_v1 = vld [vmem:[#allocation8 + $0x140] sm:$0xff]  ;;  %v624_v2 = vld [vmem:[#allocation8 + $0x148] sm:$0xff] }
  0x82   :  { %v1044_v44 = vpack.c.bf16 %v606_v42, %v605_v41  ;;  %v610_v5 = vld [vmem:[#allocation8 + $0xd8] sm:$0xff]  ;;  %v593_v9 = vld [vmem:[#allocation8 + $0x50] sm:$0xff]  ;;  %v596_v20 = vld [vmem:[#allocation8 + $0x68] sm:$0xff] }
  0x83   :  { %991 = vmatpush1.bf16.msra.mxu0 %v990_v48  ;;  %v590_v48 = vld [vmem:[#allocation8 + $0x38] sm:$0xff]  ;;  %v625_v13 = vld [vmem:[#allocation8 + $0x150] sm:$0xff]  ;;  %v627_v22 = vld [vmem:[#allocation8 + $0x160] sm:$0xff] }
  0x84   :  { %1023 = vmatpush1.bf16.msra.mxu1 %v1022_v49  ;;  %993 = vmatprep.subr.bf16.mxu0 %v992_v50  ;;  %v1076_v49 = vpack.c.bf16 %v638_v45, %v637_v43  ;;  %v1046_v50 = vpack.c.bf16 %v590_v48, %v589_v47  ;;  %v642_v8 = vld [vmem:[#allocation8 + $0x1d8] sm:$0xff]  ;;  %v628_v23 = vld [vmem:[#allocation8 + $0x168] sm:$0xff]  ;;  %v645_v27 = vld [vmem:[#allocation8 + $0x1f0] sm:$0xff] }
  0x85   :  { %1025 = vmatprep.subr.bf16.mxu1 %v1024_v54  ;;  %v607_v54 = vld [vmem:[#allocation8 + $0xc0] sm:$0xff]  ;;  %v594_v10 = vld [vmem:[#allocation8 + $0x58] sm:$0xff]  ;;  %v597_v30 = vld [vmem:[#allocation8 + $0x70] sm:$0xff] }
  0x86   :  { %v1048_v57 = vpack.c.bf16 %v608_v55, %v607_v54  ;;  %v1054_v12 = vpack.c.bf16 %v594_v10, %v593_v9  ;;  %v626_v14 = vld [vmem:[#allocation8 + $0x158] sm:$0xff]  ;;  %v629_v34 = vld [vmem:[#allocation8 + $0x170] sm:$0xff] }
  0x87   :  { %995 = vmatpush1.bf16.msra.mxu0 %v994_v60  ;;  %v592_v60 = vld [vmem:[#allocation8 + $0x48] sm:$0xff]  ;;  %v614_v26 = vld [vmem:[#allocation8 + $0xf8] sm:$0xff] }
  0x88   :  { %1027 = vmatpush1.bf16.msra.mxu1 %v1026_v62  ;;  %997 = vmatprep.subr.bf16.mxu0 %v996_v63  ;;  %v1080_v62 = vpack.c.bf16 %v640_v58, %v639_v56  ;;  %v1050_v63 = vpack.c.bf16 %v592_v60, %v591_v59  ;;  %v646_v29 = vld [vmem:[#allocation8 + $0x1f8] sm:$0xff] }
  0x89   :  { %1029 = vmatprep.subr.bf16.mxu1 %v1028_v3  ;;  %v1082_v3 = vpack.c.bf16 %v624_v2, %v623_v1  ;;  %v598_v31 = vld [vmem:[#allocation8 + $0x78] sm:$0xff] }
  0x8a   :  { %v1062_v33 = vpack.c.bf16 %v598_v31, %v597_v30  ;;  %v630_v35 = vld [vmem:[#allocation8 + $0x178] sm:$0xff] }
  0x8b   :  { %999 = vmatpush1.bf16.msra.mxu0 %v998_v6  ;;  %v641_v6 = vld [vmem:[#allocation8 + $0x1d0] sm:$0xff] }
  0x8c   :  { %1031 = vmatpush1.bf16.msra.mxu1 %v1030_v7  ;;  %1033 = vmatprep.subr.bf16.mxu0 %v1032_v11  ;;  %v1052_v7 = vpack.c.bf16 %v610_v5, %v609_v4  ;;  %v1084_v11 = vpack.c.bf16 %v642_v8, %v641_v6 }
  0x8d   :  { %1065 = vmatprep.subr.bf16.mxu1 %v1064_v15  ;;  %v1086_v15 = vpack.c.bf16 %v626_v14, %v625_v13 }
  0x8e   :  { %428 = vmatmul.mubr.f32.vlgmr.msra.gmra.mrb[4].mxu0 %v1360_v46 }
  0x8f   :  { %505 = vmatmul.mubr.f32.vlgmr.msra.gmra.mrb[4].mxu1 %v1360_v46  ;;  %433 = vmatprep.mubr.f32.mxu0 %v1264_v0  ;;  %v1066_v46 = vpack.c.bf16 %v616_v18, %v615_v17  ;;  %v612_v17 = vld [vmem:[#allocation8 + $0xe8] sm:$0xff]  ;;  %v643_v18 = vld [vmem:[#allocation8 + $0x1e0] sm:$0xff] }
  0x90   :  { %510 = vmatprep.mubr.f32.mxu1 %v1264_v0  ;;  %1035 = vmatpush3.bf16.msra.mxu0 %v1034_v16  ;;  %v601_v0 = vld [vmem:[#allocation8 + $0x90] sm:$0xff]  ;;  %v611_v16 = vld [vmem:[#allocation8 + $0xe0] sm:$0xff] }
  0x91   :  { %1067 = vmatpush3.bf16.msra.mxu1 %v1066_v46  ;;  %v1056_v46 = vpack.c.bf16 %v612_v17, %v611_v16 }
  0x92   :  { %434 = vmatmul.mubr.f32.gmra.mrb[6].mxu0 %v1364_v61  ;;  %1069 = vmatprep.subr.bf16.mxu1 %v1068_v24  ;;  %v1090_v24 = vpack.c.bf16 %v628_v23, %v627_v22 }
  0x93   :  { %511 = vmatmul.mubr.f32.gmra.mrb[6].mxu1 %v1364_v61  ;;  %v1036_v61 = vpack.c.bf16 %v602_v19, %v601_v0  ;;  %v644_v0 = vld [vmem:[#allocation8 + $0x1e8] sm:$0xff]  ;;  %v595_v19 = vld [vmem:[#allocation8 + $0x60] sm:$0xff] }
  0x94   :  { %v1058_v21 = vpack.c.bf16 %v596_v20, %v595_v19 }
  0x95   :  { %1037 = vmatprep.subr.bf16.mxu0 %v1036_v61  ;;  %1071 = vmatpush3.bf16.msra.mxu1 %v1070_v28  ;;  %v1088_v61 = vpack.c.bf16 %v644_v0, %v643_v18 }
  0x96   :  { %1039 = vmatpush3.bf16.msra.mxu0 %v1038_v25  ;;  %1073 = vmatprep.subr.bf16.mxu1 %v1072_v36  ;;  %v613_v25 = vld [vmem:[#allocation8 + $0xf0] sm:$0xff]  ;;  %v1094_v36 = vpack.c.bf16 %v630_v35, %v629_v34 }
  0x97   :  { %1041 = vmatprep.subr.bf16.mxu0 %v1040_v32  ;;  %v1060_v28 = vpack.c.bf16 %v614_v26, %v613_v25  ;;  %v1092_v32 = vpack.c.bf16 %v646_v29, %v645_v27 }
  0x99   :  { %1075 = vmatpush3.bf16.msra.mxu1 %v1074_v40 }
  0x9a   :  { %1043 = vmatpush3.bf16.msra.mxu0 %v1042_v37  ;;  %1077 = vmatprep.subr.bf16.mxu1 %v1076_v49 }
  0x9b   :  { %1045 = vmatprep.subr.bf16.mxu0 %v1044_v44 }
  0x9d   :  { %1079 = vmatpush3.bf16.msra.mxu1 %v1078_v53 }
  0x9e   :  { %1047 = vmatpush3.bf16.msra.mxu0 %v1046_v50  ;;  %1081 = vmatprep.subr.bf16.mxu1 %v1080_v62 }
  0x9f   :  { %1049 = vmatprep.subr.bf16.mxu0 %v1048_v57 }
  0xa1   :  { %1083 = vmatpush3.bf16.msra.mxu1 %v1082_v3 }
  0xa2   :  { %1051 = vmatpush3.bf16.msra.mxu0 %v1050_v63  ;;  %1085 = vmatprep.subr.bf16.mxu1 %v1084_v11 }
  0xa3   :  { %1053 = vmatprep.subr.bf16.mxu0 %v1052_v7 }
  0xa5   :  { %1087 = vmatpush3.bf16.msra.mxu1 %v1086_v15 }
  0xa6   :  { %1055 = vmatpush3.bf16.msra.mxu0 %v1054_v12  ;;  %1089 = vmatprep.subr.bf16.mxu1 %v1088_v61 }
  0xa7   :  { %1057 = vmatprep.subr.bf16.mxu0 %v1056_v46 }
  0xa9   :  { %1091 = vmatpush3.bf16.msra.mxu1 %v1090_v24 }
  0xaa   :  { %1059 = vmatpush3.bf16.msra.mxu0 %v1058_v21  ;;  %1093 = vmatprep.subr.bf16.mxu1 %v1092_v32 }
  0xab   :  { %1061 = vmatprep.subr.bf16.mxu0 %v1060_v28 }
  0xad   :  { %1095 = vmatpush3.bf16.msra.mxu1 %v1094_v36 }
  0xae   :  { %1063 = vmatpush3.bf16.msra.mxu0 %v1062_v33 }
 0x141   :  { %v211_v37 = vpop.f32.mrb[0].mxu0 }
 0x142   :  { %v820_v38 = vmul.f32 -1.442695, %v211_v37  ;;  %v288_v39 = vpop.f32.mrb[0].mxu1  ;;  %v213_v40 = vpop.f32.mrb[1].mxu0 }
 0x143   :  { %v822_v41 = vmul.f32 -1.442695, %v288_v39  ;;  %v821_v42 = vmul.f32 -1.442695, %v213_v40  ;;  %v290_v43 = vpop.f32.mrb[1].mxu1 }
 0x144   :  { %1106 = vpow2.f32 %v820_v38  ;;  %v823_v44 = vmul.f32 -1.442695, %v290_v43 }
 0x145   :  { %1108 = vpow2.f32 %v822_v41  ;;  %v217_v45 = vpop.f32.mrb[2].mxu0 }
 0x146   :  { %1110 = vpow2.f32 %v821_v42  ;;  %v824_v47 = vmul.f32 -1.442695, %v217_v45  ;;  %v294_v48 = vpop.f32.mrb[2].mxu1  ;;  %v219_v49 = vpop.f32.mrb[3].mxu0 }
 0x147   :  { %1112 = vpow2.f32 %v823_v44  ;;  %v826_v50 = vmul.f32 -1.442695, %v294_v48  ;;  %v825_v51 = vmul.f32 -1.442695, %v219_v49  ;;  %v296_v52 = vpop.f32.mrb[3].mxu1 }
 0x148   :  { %1114 = vpow2.f32 %v824_v47  ;;  %v827_v53 = vmul.f32 -1.442695, %v296_v52 }
 0x149   :  { %1116 = vpow2.f32 %v826_v50 }
 0x14a   :  { %1118 = vpow2.f32 %v825_v51 }
 0x14b   :  { %1120 = vpow2.f32 %v827_v53 }
 0x14e   :  { %v1107_v54 = vpop.eup %1106 }
 0x14f   :  { %v1109_v55 = vpop.eup %1108  ;;  %v541_v56 = vadd.f32 1.0, %v1107_v54 }
 0x150   :  { %v1111_v57 = vpop.eup %1110  ;;  %v543_v58 = vadd.f32 1.0, %v1109_v55 }
 0x151   :  { %v1113_v59 = vpop.eup %1112  ;;  %v542_v60 = vadd.f32 1.0, %v1111_v57  ;;  %1122 = vrcp.f32 %v541_v56 }
 0x152   :  { %v1115_v62 = vpop.eup %1114  ;;  %v544_v63 = vadd.f32 1.0, %v1113_v59  ;;  %1124 = vrcp.f32 %v543_v58 }
 0x153   :  { %v1117_v1 = vpop.eup %1116  ;;  %v545_v2 = vadd.f32 1.0, %v1115_v62  ;;  %1126 = vrcp.f32 %v542_v60 }
 0x154   :  { %v1119_v3 = vpop.eup %1118  ;;  %v547_v4 = vadd.f32 1.0, %v1117_v1  ;;  %1128 = vrcp.f32 %v544_v63 }
 0x155   :  { %v1121_v5 = vpop.eup %1120  ;;  %v546_v6 = vadd.f32 1.0, %v1119_v3  ;;  %1130 = vrcp.f32 %v545_v2 }
 0x156   :  { %v548_v7 = vadd.f32 1.0, %v1121_v5  ;;  %1132 = vrcp.f32 %v547_v4 }
 0x157   :  { %1134 = vrcp.f32 %v546_v6 }
 0x158   :  { %1136 = vrcp.f32 %v548_v7 }
 0x15b   :  { %v1123_v8 = vpop.eup %1122 }
 0x15c   :  { %v1125_v9 = vpop.eup %1124  ;;  %v565_v13 = vmul.f32 %v1123_v8, %v211_v37 }
 0x15d   :  { %v1127_v10 = vpop.eup %1126  ;;  %v567_v15 = vmul.f32 %v1125_v9, %v288_v39 }
 0x15e   :  { %v1129_v11 = vpop.eup %1128  ;;  %v566_v16 = vmul.f32 %v1127_v10, %v213_v40 }
 0x15f   :  { %v1131_v12 = vpop.eup %1130  ;;  %v568_v46 = vmul.f32 %v1129_v11, %v290_v43 }
 0x160   :  { %v1133_v14 = vpop.eup %1132  ;;  %v569_v24 = vmul.f32 %v1131_v12, %v217_v45 }
 0x161   :  { %v429_v17 = vpop.f32.mrb[4].mxu0  ;;  %v1135_v18 = vpop.eup %1134  ;;  %v571_v26 = vmul.f32 %v1133_v14, %v294_v48 }
 0x162   :  { %v573_v0 = vmul.f32 %v565_v13, %v429_v17  ;;  %v506_v19 = vpop.f32.mrb[4].mxu1  ;;  %v431_v20 = vpop.f32.mrb[5].mxu0  ;;  %v570_v27 = vmul.f32 %v1135_v18, %v219_v49 }
 0x163   :  { %v1137_v61 = vpop.eup %1136  ;;  %v575_v21 = vmul.f32 %v567_v15, %v506_v19  ;;  %v574_v22 = vmul.f32 %v566_v16, %v431_v20  ;;  %v508_v23 = vpop.f32.mrb[5].mxu1 }
 0x164   :  { %v576_v25 = vmul.f32 %v568_v46, %v508_v23  ;;  %v572_v29 = vmul.f32 %v1137_v61, %v296_v52 }
 0x165   :  { %v435_v28 = vpop.f32.mrb[6].mxu0  ;;  %711 = vmatprep.mubr.f32.mxu0 %v574_v22 }
 0x166   :  { %v577_v30 = vmul.f32 %v569_v24, %v435_v28  ;;  %v512_v31 = vpop.f32.mrb[6].mxu1  ;;  %786 = vmatprep.mubr.f32.mxu1 %v576_v25  ;;  %v437_v32 = vpop.f32.mrb[7].mxu0  ;;  %712 = vmatmul.mubr.f32.vlgmr.msra.gmra.mrb[8].mxu0 %v573_v0 }
 0x167   :  { %v579_v33 = vmul.f32 %v571_v26, %v512_v31  ;;  %v578_v34 = vmul.f32 %v570_v27, %v437_v32  ;;  %v514_v35 = vpop.f32.mrb[7].mxu1  ;;  %787 = vmatmul.mubr.f32.vlgmr.msra.gmra.mrb[8].mxu1 %v575_v21 }
 0x168   :  { %v580_v36 = vmul.f32 %v572_v29, %v514_v35 }
 0x169   :  { %716 = vmatprep.mubr.f32.mxu0 %v578_v34 }
 0x16a   :  { %791 = vmatprep.mubr.f32.mxu1 %v580_v36  ;;  %717 = vmatmul.mubr.f32.gmra.mrb[10].mxu0 %v577_v30 }
 0x16b   :  { %792 = vmatmul.mubr.f32.gmra.mrb[10].mxu1 %v579_v33 }
 0x239   :  { %v860_v37 = vpop.f32.mrb[8].mxu0 }
 0x23a   :  { %v898_v38 = vpop.f32.mrb[8].mxu1  ;;  %v861_v39 = vpop.f32.mrb[9].mxu0 }
 0x23b   :  { %v862_v40 = vadd.f32 %v861_v39, %v860_v37  ;;  %v899_v41 = vpop.f32.mrb[9].mxu1 }
 0x23c   :  { %v900_v42 = vadd.f32 %v899_v41, %v898_v38 }
 0x23d   :  { %v863_v43 = vpop.f32.mrb[10].mxu0 }
 0x23e   :  { %v789_v44 = vadd.f32 %v900_v42, %v862_v40  ;;  %v901_v45 = vpop.f32.mrb[10].mxu1  ;;  %v864_v47 = vpop.f32.mrb[11].mxu0 }
 0x23f   :  { %v865_v48 = vadd.f32 %v864_v47, %v863_v43  ;;  %v902_v49 = vpop.f32.mrb[11].mxu1 }
 0x240   :  { %v903_v50 = vadd.f32 %v902_v49, %v901_v45  ;;  %799 = vst [vmem:[#allocation10] sm:$0xff] %v789_v44 }
 0x242   :  { %v794_v51 = vadd.f32 %v903_v50, %v865_v48 }
 0x244   :  { %800 = vst [vmem:[#allocation10 + $0x8] sm:$0xff] %v794_v51 }
 0x245   :  { %1237 = shalt.err (!%p1234_p8)
}
 0x246   :  { %s1238_s17 = scalar_lea.hbm %s1397_s4, 256 }
 0x247   :  { %p1239_p9 = scmp.ne.s32.totalorder %s1397_s4, %s1238_s17  ;;  %p1242_p10 = scmp.lt.u32.totalorder %s1238_s17, %s1397_s4 }
 0x249   :  { %p1244_p11 = pnand %p1242_p10, %p1239_p9 }
 0x24b   :  { %1247 = shalt.err (!%p1244_p11)
}
 0x24c   :  { %812 = dma.vmem_to_hbm [thread:$0]  %s807_s26, 256, %s1397_s4, [#allocation4], %s1260_s1, %s1260_s1, %s1261_s13  }
 0x24d   :  { %1254 = dma.done.wait [#allocation4], 256  }
 0x24e   :  { %1255 = vsyncadd [#allocation4], 4294967040 }
 0x24f   :  { %816 = vsyncpa [#allocation3], 1 }
 0x250   :  { %817 = vsyncpa [#allocation6], 1 }
 0x251   :  { %818 = vsyncpa [#allocation9], 1 }
 0x252   :  { %819 = vsyncpa [#allocation4], 1 }

</bundles_post_ra>
